<compile_context>
chip_gen: v7x
topology: tpu7x:2x2x1
jax: 0.10.0
libtpu: 0.0.40
codegen_flags: <defaults>
</compile_context>

<pallas_src>
import jax
import jax.numpy as jnp
from jax.experimental import pallas as pl
from jax.experimental.pallas import tpu as pltpu


def _cdiv(a, b):
    return -(-a // b)


def critic_kernel(x_ref, w1_ref, b1_ref, w2_ref, b2_ref, v_ref):
    x = x_ref[...]                          # (K, TB)   batch on lanes, K = state_dim
    w1 = w1_ref[...]                        # (H, K)    hidden on sublanes
    hidden, k_dim = w1.shape
    tb = x.shape[1]

    # fc1: h[j, b] = b1[j] + sum_k w1[j, k] * x[k, b]   (unrolled VPU FMAs)
    h = jnp.broadcast_to(b1_ref[...], (hidden, tb))     # (128,1) lane-broadcast, once
    for k in range(k_dim):                               # static unroll over tiny K
        h = h + w1[:, k:k + 1] * x[k:k + 1, :]           # col lane-bcast * row sublane-bcast
    h = jnp.maximum(h, 0.0)                              # ReLU on the VPU

    # fc_v (128 -> 1): sublane-weighted reduce -> lane-dense (1, TB) row.
    v = jnp.sum(h * w2_ref[...], axis=0, keepdims=True)
    v_ref[...] = (v + b2_ref[0]).astype(v_ref.dtype)


def critic_forward(x, w1, b1, w2, b2, *,
                   target_steps=4, max_tile=8192, small_batch=64):
    """Critic forward pass.

    x  : (B, state_dim) f32
    w1 : (state_dim, 128) f32   (transpose of PyTorch fc1.weight)
    b1 : (128,) or (1, 128) f32
    w2 : (128,) / (128, 1) f32  (transpose of PyTorch fc_v.weight)
    b2 : scalar / (1,) / (1, 1) f32
    returns (B, 1) f32
    """
    x = jnp.asarray(x, jnp.float32)
    B, state_dim = x.shape
    w1 = jnp.asarray(w1, jnp.float32)
    assert w1.shape[0] == state_dim, "w1 must be (state_dim, hidden)"
    hidden = w1.shape[1]

    # Normalize parameter shapes (robust to 1-D params).
    b1_row = jnp.asarray(b1, jnp.float32).reshape(1, hidden)
    w2_col = jnp.asarray(w2, jnp.float32).reshape(hidden, 1)
    b2_s = jnp.asarray(b2, jnp.float32).reshape(1)

    # Tiny batches: plain fused XLA path; pallas_call overhead would dominate.
    if B <= small_batch:
        return jnp.maximum(x @ w1 + b1_row, 0.0) @ w2_col + b2_s

    # ---- Pallas path (rollout-sized batches) ----
    # Batch-on-lanes plumbing.
    x_t = x.T                                # (state_dim, B), lane-dense batch
    w1_t = w1.T                              # (hidden, state_dim) columns
    b1_col = b1_row.reshape(hidden, 1)       # (hidden, 1) column

    # Tile selection: multiple of 128 lanes, ~target_steps grid steps,
    # capped so v7x's smaller VMEM stays comfortable.
    n128 = _cdiv(B, 128)
    steps = max(1, min(target_steps, n128))
    tb = 128 * _cdiv(n128, steps)
    tb = min(tb, max_tile)
    grid = _cdiv(B, tb)
    Bp = grid * tb
    if Bp != B:
        x_t = jnp.pad(x_t, ((0, 0), (0, Bp - B)))

    out = pl.pallas_call(
        critic_kernel,
        out_shape=jax.ShapeDtypeStruct((1, Bp), jnp.float32),
        grid=(grid,),
        in_specs=[
            pl.BlockSpec((state_dim, tb), lambda i: (0, i)),       # x^T tile
            pl.BlockSpec((hidden, state_dim), lambda i: (0, 0)),   # w1^T (full)
            pl.BlockSpec((hidden, 1), lambda i: (0, 0)),           # b1 column
            pl.BlockSpec((hidden, 1), lambda i: (0, 0)),           # w2 column
            pl.BlockSpec(memory_space=pltpu.MemorySpace.SMEM),     # b2 scalar (1,)
        ],
        out_specs=pl.BlockSpec((1, tb), lambda i: (0, i)),         # lane-dense row
        compiler_params=pltpu.CompilerParams(
            dimension_semantics=("parallel",),
        ),
    )(x_t, w1_t, b1_col, w2_col, b2_s)

    return out[0, :B].reshape(B, 1)


def init_params(key, state_dim, hidden=128):
    """Deterministic init mimicking PyTorch nn.Linear default:
    U(-1/sqrt(fan_in), 1/sqrt(fan_in)); weights stored as (in, out)."""
    k1, k2, k3, k4 = jax.random.split(key, 4)
    bound1 = 1.0 / jnp.sqrt(jnp.float32(state_dim))
    bound2 = 1.0 / jnp.sqrt(jnp.float32(hidden))
    w1 = jax.random.uniform(k1, (state_dim, hidden), jnp.float32, -bound1, bound1)
    b1 = jax.random.uniform(k2, (1, hidden), jnp.float32, -bound1, bound1)
    w2 = jax.random.uniform(k3, (hidden, 1), jnp.float32, -bound2, bound2)
    b2 = jax.random.uniform(k4, (1, 1), jnp.float32, -bound2, bound2)
    return w1, b1, w2, b2


def _ref_forward(x, w1, b1, w2, b2):
    return jnp.maximum(x @ w1 + b1, 0.0) @ w2 + b2


if __name__ == "__main__":
    state_dim = 3   # Pendulum-v1 observation dim
    key = jax.random.PRNGKey(0)
    kx, kp, kx2 = jax.random.split(key, 3)
    w1, b1, w2, b2 = init_params(kp, state_dim)

    # 1) Small inference-style batch: dispatches to the fused XLA path.
    batch = 8
    x = jax.random.normal(kx, (batch, state_dim), jnp.float32)
    v = jax.block_until_ready(critic_forward(x, w1, b1, w2, b2))
    ref = _ref_forward(x, w1, b1, w2, b2)
    assert v.shape == (batch, 1)
    assert jnp.allclose(v, ref, atol=1e-5, rtol=1e-5)

    # 1b) Same tiny batch forced through the Pallas kernel (single tile).
    v_k = jax.block_until_ready(critic_forward(x, w1, b1, w2, b2, small_batch=0))
    assert v_k.shape == (batch, 1)
    assert jnp.allclose(v_k, ref, atol=1e-5, rtol=1e-5)

    # 2) Rollout-style ragged batch: exercises multi-step grid + padding path.
    batch2 = 520
    x2 = jax.random.normal(kx2, (batch2, state_dim), jnp.float32)
    v2 = jax.block_until_ready(critic_forward(x2, w1, b1, w2, b2))
    ref2 = _ref_forward(x2, w1, b1, w2, b2)
    assert v2.shape == (batch2, 1)
    assert jnp.allclose(v2, ref2, atol=1e-5, rtol=1e-5)

    print("KERNEL_OK")
</pallas_src>

<mosaic_0001>
module attributes {stable_mosaic.version = 11 : i64} {
  func.func @critic_kernel(%arg0: i32, %arg1: memref<3x128xf32, #tpu.memory_space<vmem>>, %arg2: memref<128x3xf32, #tpu.memory_space<vmem>>, %arg3: memref<128x1xf32, #tpu.memory_space<vmem>>, %arg4: memref<128x1xf32, #tpu.memory_space<vmem>>, %arg5: memref<1xf32, #tpu.memory_space<smem>>, %arg6: memref<1x128xf32, #tpu.memory_space<vmem>>) attributes {dimension_semantics = [#tpu.dimension_semantics<parallel>], iteration_bounds = array<i64: 1>, scalar_prefetch = 0 : i64, scratch_operands = 0 : i64, tpu.core_type = #tpu.core_type<tc>, window_params = [{transform_indices = @transform_0, window_bounds = array<i64: 3, 128>}, {pipeline_mode = #tpu.pipeline_mode<synchronous>, transform_indices = @transform_1, window_bounds = array<i64: 128, 3>}, {pipeline_mode = #tpu.pipeline_mode<synchronous>, transform_indices = @transform_2, window_bounds = array<i64: 128, 1>}, {pipeline_mode = #tpu.pipeline_mode<synchronous>, transform_indices = @transform_3, window_bounds = array<i64: 128, 1>}, {transform_indices = @transform_4, window_bounds = array<i64: 1>}, {transform_indices = @transform_5, window_bounds = array<i64: 1, 128>}]} {
    %c0 = arith.constant 0 : index
    %c0_0 = arith.constant 0 : index
    %0 = vector.load %arg1[%c0, %c0_0] : memref<3x128xf32, #tpu.memory_space<vmem>>, vector<3x128xf32>
    %c0_1 = arith.constant 0 : index
    %c0_2 = arith.constant 0 : index
    %1 = vector.load %arg2[%c0_1, %c0_2] : memref<128x3xf32, #tpu.memory_space<vmem>>, vector<128x3xf32>
    %c0_3 = arith.constant 0 : index
    %c0_4 = arith.constant 0 : index
    %2 = vector.load %arg3[%c0_3, %c0_4] : memref<128x1xf32, #tpu.memory_space<vmem>>, vector<128x1xf32>
    %3 = vector.shape_cast %2 : vector<128x1xf32> to vector<128x1xf32>
    %4 = vector.broadcast %3 : vector<128x1xf32> to vector<128x128xf32>
    %5 = vector.extract_strided_slice %1 {offsets = [0, 0], sizes = [128, 1], strides = [1, 1]} : vector<128x3xf32> to vector<128x1xf32>
    %6 = vector.extract_strided_slice %0 {offsets = [0, 0], sizes = [1, 128], strides = [1, 1]} : vector<3x128xf32> to vector<1x128xf32>
    %7 = vector.broadcast %5 : vector<128x1xf32> to vector<128x128xf32>
    %8 = vector.broadcast %6 : vector<1x128xf32> to vector<128x128xf32>
    %9 = arith.mulf %7, %8 : vector<128x128xf32>
    %10 = arith.addf %4, %9 : vector<128x128xf32>
    %11 = vector.extract_strided_slice %1 {offsets = [0, 1], sizes = [128, 1], strides = [1, 1]} : vector<128x3xf32> to vector<128x1xf32>
    %12 = vector.extract_strided_slice %0 {offsets = [1, 0], sizes = [1, 128], strides = [1, 1]} : vector<3x128xf32> to vector<1x128xf32>
    %13 = vector.broadcast %11 : vector<128x1xf32> to vector<128x128xf32>
    %14 = vector.broadcast %12 : vector<1x128xf32> to vector<128x128xf32>
    %15 = arith.mulf %13, %14 : vector<128x128xf32>
    %16 = arith.addf %10, %15 : vector<128x128xf32>
    %17 = vector.extract_strided_slice %1 {offsets = [0, 2], sizes = [128, 1], strides = [1, 1]} : vector<128x3xf32> to vector<128x1xf32>
    %18 = vector.extract_strided_slice %0 {offsets = [2, 0], sizes = [1, 128], strides = [1, 1]} : vector<3x128xf32> to vector<1x128xf32>
    %19 = vector.broadcast %17 : vector<128x1xf32> to vector<128x128xf32>
    %20 = vector.broadcast %18 : vector<1x128xf32> to vector<128x128xf32>
    %21 = arith.mulf %19, %20 : vector<128x128xf32>
    %22 = arith.addf %16, %21 : vector<128x128xf32>
    %cst = arith.constant 0.000000e+00 : f32
    %23 = vector.broadcast %cst : f32 to vector<128x128xf32>
    %24 = arith.maximumf %22, %23 : vector<128x128xf32>
    %c0_5 = arith.constant 0 : index
    %c0_6 = arith.constant 0 : index
    %25 = vector.load %arg4[%c0_5, %c0_6] : memref<128x1xf32, #tpu.memory_space<vmem>>, vector<128x1xf32>
    %26 = vector.broadcast %25 : vector<128x1xf32> to vector<128x128xf32>
    %27 = arith.mulf %24, %26 : vector<128x128xf32>
    %cst_7 = arith.constant dense<0.000000e+00> : vector<128xf32>
    %28 = vector.multi_reduction <add>, %27, %cst_7 [0] : vector<128x128xf32> to vector<128xf32>
    %29 = vector.shape_cast %28 : vector<128xf32> to vector<1x128xf32>
    %c0_8 = arith.constant 0 : index
    %30 = memref.load %arg5[%c0_8] : memref<1xf32, #tpu.memory_space<smem>>
    %31 = vector.broadcast %30 : f32 to vector<1x128xf32>
    %32 = arith.addf %29, %31 : vector<1x128xf32>
    %c0_9 = arith.constant 0 : index
    %c0_10 = arith.constant 0 : index
    %33 = vector.load %arg6[%c0_9, %c0_10] : memref<1x128xf32, #tpu.memory_space<vmem>>, vector<1x128xf32>
    tpu.vector_store %arg6[%c0_9, %c0_10], %32 {strides = array<i32>} : memref<1x128xf32, #tpu.memory_space<vmem>>, vector<1x128xf32>,
    return
  }
  func.func @transform_0(%arg0: i32) -> (i32, i32) {
    %c0_i32 = arith.constant 0 : i32
    %c0_i32_0 = arith.constant 0 : i32
    return %c0_i32, %arg0 : i32, i32
  }
  func.func @transform_1(%arg0: i32) -> (i32, i32) {
    %c0_i32 = arith.constant 0 : i32
    %c0_i32_0 = arith.constant 0 : i32
    %c0_i32_1 = arith.constant 0 : i32
    return %c0_i32, %c0_i32_0 : i32, i32
  }
  func.func @transform_2(%arg0: i32) -> (i32, i32) {
    %c0_i32 = arith.constant 0 : i32
    %c0_i32_0 = arith.constant 0 : i32
    %c0_i32_1 = arith.constant 0 : i32
    return %c0_i32, %c0_i32_0 : i32, i32
  }
  func.func @transform_3(%arg0: i32) -> (i32, i32) {
    %c0_i32 = arith.constant 0 : i32
    %c0_i32_0 = arith.constant 0 : i32
    %c0_i32_1 = arith.constant 0 : i32
    return %c0_i32, %c0_i32_0 : i32, i32
  }
  func.func @transform_4(%arg0: i32) -> i32 {
    %c0_i32 = arith.constant 0 : i32
    %c0_i32_0 = arith.constant 0 : i32
    return %c0_i32 : i32
  }
  func.func @transform_5(%arg0: i32) -> (i32, i32) {
    %c0_i32 = arith.constant 0 : i32
    %c0_i32_0 = arith.constant 0 : i32
    return %c0_i32, %arg0 : i32, i32
  }
}

</mosaic_0001>

<bundles_post_ra>
// kernel: tpu_custom_call.1
= control target key start
LH: loop header
LB: loop body
LE: loop exit
PB: predicated region body
PF: predicated region fallthrough
CT: control target
= control target key end

     0   :  { %v663_v2 = vmov 1   ;;  %v664_v3 = vmov 0   ;;  %s1053_s0 = inlined_call_operand.vmem [shape: f32[3,128], index: 0, kind: input, shape index: {}]   ;;  %s1054_s1 = inlined_call_operand.vmem [shape: f32[128,3], index: 1, kind: input, shape index: {}]   ;;  %s1055_s2 = inlined_call_operand.vmem [shape: f32[128,1], index: 2, kind: input, shape index: {}]   ;;  %s1056_s3 = inlined_call_operand.vmem [shape: f32[128,1], index: 3, kind: input, shape index: {}]   ;;  %s1057_s4 = inlined_call_operand.<no memory space> [shape: f32[1], index: 4, kind: input, shape index: {}]   ;;  %s1058_s5 = inlined_call_operand.hbm [shape: f32[1,128], index: 5, kind: output, shape index: {}]  }
   0x1   :  { %v41_v0 = vld [vmem:[%s1055_s2 + $0x10] sm:$0xff]  ;;  %v703_v1 = vld [vmem:[%s1054_s1] sm:$0xff]  ;;  %623 = vset.pattern.permute.xlu0 %v663_v2  ;;  %622 = vset.pattern.permute.xlu1 %v664_v3  ;;  %v42_v4 = vld [vmem:[%s1055_s2 + $0x18] sm:$0xff] }
   0x2   :  { %67 = vperm.xlu1 %622, %v41_v0   ;;  %252 = vperm.xlu0 %623, %v703_v1   ;;  %v713_v5 = vld [vmem:[%s1054_s1 + $0x18] sm:$0xff]  ;;  %v44_v6 = vld [vmem:[%s1055_s2 + $0x28] sm:$0xff] }
   0x3   :  { %v722_v7 = vld [vmem:[%s1054_s1 + $0x28] sm:$0xff]  ;;  %v46_v8 = vld [vmem:[%s1055_s2 + $0x38] sm:$0xff] }
   0x4   :  { %v731_v9 = vld [vmem:[%s1054_s1 + $0x38] sm:$0xff] }
   0x6   :  { %72 = vperm.xlu1 %622, %v42_v4   ;;  %264 = vperm.xlu0 %623, %v713_v5  }
   0xa   :  { %82 = vperm.xlu1 %622, %v44_v6   ;;  %272 = vperm.xlu0 %623, %v722_v7  }
   0xb   :  { %11 = vsyncpa [#allocation4], 0  ;;  %v48_v10 = vld [vmem:[%s1055_s2 + $0x48] sm:$0xff]  ;;  %v50_v12 = vld [vmem:[%s1055_s2 + $0x58] sm:$0xff]  ;;  %v665_v19 = vmov 2   ;;  %v215_v57 = vlaneseq  ;;  %s666_s12 = smov [#allocation3]  }
   0xc   :  { %v740_v11 = vld [vmem:[%s1054_s1 + $0x48] sm:$0xff]  ;;  %v749_v13 = vld [vmem:[%s1054_s1 + $0x58] sm:$0xff]  ;;  %v27_v20 = vld [vmem:[%s1054_s1 + $0x20] sm:$0xff]  ;;  %s610_s13 = sshll.u32 %s666_s12, 4  ;;  %s611_s13 = int_to_ptr.vmem [resolvable:$true] %s610_s13 }
   0xd   :  { %v52_v14 = vld [vmem:[%s1055_s2 + $0x68] sm:$0xff]  ;;  %v54_v16 = vld [vmem:[%s1055_s2 + $0x78] sm:$0xff]  ;;  %v29_v21 = vld [vmem:[%s1054_s1 + $0x30] sm:$0xff]  ;;  %v884_v60 = vshrl.u32 %v215_v57, 7  ;;  %s639_s14 = scalar_lea.vmem %s611_s13, 16  ;;  %s643_s15 = scalar_lea.vmem %s611_s13, 32 }
   0xe   :  { %92 = vperm.xlu1 %622, %v46_v8   ;;  %280 = vperm.xlu0 %623, %v731_v9   ;;  %v758_v15 = vld [vmem:[%s1054_s1 + $0x68] sm:$0xff]  ;;  %v767_v17 = vld [vmem:[%s1054_s1 + $0x78] sm:$0xff]  ;;  %v39_v22 = vld [vmem:[%s1055_s2] sm:$0xff]  ;;  %p640_p0 = scmp.ne.s32.totalorder %s611_s13, %s639_s14  ;;  %p644_p1 = scmp.lt.s32.totalorder %s611_s13, %s611_s13 }
   0xf   :  { %v24_v18 = vld [vmem:[%s1054_s1 + $0x8] sm:$0xff]  ;;  %v43_v24 = vld [vmem:[%s1055_s2 + $0x20] sm:$0xff]  ;;  %v45_v25 = vld [vmem:[%s1055_s2 + $0x30] sm:$0xff]  ;;  %v317_v0 = vsub.s32 1, %v884_v60  ;;  %p645_p2 = scmp.lt.s32.totalorder %s643_s15, %s639_s14 }
  0x10   :  { %v40_v23 = vld [vmem:[%s1055_s2 + $0x8] sm:$0xff]  ;;  %v47_v26 = vld [vmem:[%s1055_s2 + $0x40] sm:$0xff]  ;;  %v49_v27 = vld [vmem:[%s1055_s2 + $0x50] sm:$0xff] }
  0x11   :  { %v25_v28 = vld [vmem:[%s1054_s1 + $0x10] sm:$0xff]  ;;  %v51_v29 = vld [vmem:[%s1055_s2 + $0x60] sm:$0xff]  ;;  %v468_v35 = vld [vmem:[%s1056_s3 + $0x8] sm:$0xff]  ;;  %p646_p3 = por %p645_p2, %p644_p1 }
  0x12   :  { %102 = vperm.xlu1 %622, %v48_v10   ;;  %288 = vperm.xlu0 %623, %v740_v11   ;;  %v53_v30 = vld [vmem:[%s1055_s2 + $0x70] sm:$0xff]  ;;  %v31_v31 = vld [vmem:[%s1054_s1 + $0x40] sm:$0xff]  ;;  %v474_v38 = vld [vmem:[%s1056_s3 + $0x38] sm:$0xff] }
  0x13   :  { %v33_v32 = vld [vmem:[%s1054_s1 + $0x50] sm:$0xff]  ;;  %v35_v33 = vld [vmem:[%s1054_s1 + $0x60] sm:$0xff]  ;;  %v470_v41 = vld [vmem:[%s1056_s3 + $0x18] sm:$0xff]  ;;  %p647_p4 = pnand %p646_p3, %p640_p0 }
  0x14   :  { %v828_v34 = vld [vmem:[%s1054_s1 + $0x70] sm:$0xff]  ;;  %v467_v36 = vld [vmem:[%s1056_s3] sm:$0xff]  ;;  %v472_v48 = vld [vmem:[%s1056_s3 + $0x28] sm:$0xff] }
  0x15   :  { %v471_v37 = vld [vmem:[%s1056_s3 + $0x20] sm:$0xff]  ;;  %v469_v39 = vld [vmem:[%s1056_s3 + $0x10] sm:$0xff] }
  0x16   :  { %112 = vperm.xlu1 %622, %v50_v12   ;;  %296 = vperm.xlu0 %623, %v749_v13   ;;  %v477_v40 = vld [vmem:[%s1056_s3 + $0x50] sm:$0xff]  ;;  %v475_v61 = vld [vmem:[%s1056_s3 + $0x40] sm:$0xff] }
  0x17   :  { %v481_v49 = vld [vmem:[%s1056_s3 + $0x70] sm:$0xff]  ;;  %v22_v4 = vld [vmem:[%s1053_s0] sm:$0x7] }
  0x18   :  { %v473_v52 = vld [vmem:[%s1056_s3 + $0x30] sm:$0xff]  ;;  %v902_v6 = vrot.slane %v22_v4, %v317_v0 }
  0x1a   :  { %122 = vperm.xlu1 %622, %v52_v14   ;;  %304 = vperm.xlu0 %623, %v758_v15  }
  0x1e   :  { %132 = vperm.xlu1 %622, %v54_v16   ;;  %312 = vperm.xlu0 %623, %v767_v17  }
  0x22   :  { %142 = vperm.xlu1 %622, %v24_v18   ;;  %626 = vset.pattern.permute.xlu0 %v665_v19 }
  0x23   :  { %356 = vperm.xlu0 %626, %v24_v18  }
  0x26   :  { %152 = vperm.xlu1 %622, %v713_v5  }
  0x27   :  { %368 = vperm.xlu0 %626, %v27_v20  }
  0x2a   :  { %162 = vperm.xlu1 %622, %v722_v7  }
  0x2b   :  { %376 = vperm.xlu0 %626, %v29_v21  }
  0x2e   :  { %172 = vperm.xlu1 %622, %v731_v9  }
  0x2f   :  { %630 = vset.pattern.permute.xlu0 %v664_v3 }
  0x30   :  { %57 = vperm.xlu0 %630, %v39_v22  }
  0x32   :  { %182 = vperm.xlu1 %622, %v740_v11  }
  0x34   :  { %62 = vperm.xlu0 %630, %v40_v23  }
  0x36   :  { %192 = vperm.xlu1 %622, %v749_v13  }
  0x38   :  { %77 = vperm.xlu0 %630, %v43_v24  }
  0x3a   :  { %202 = vperm.xlu1 %622, %v758_v15  }
  0x3c   :  { %87 = vperm.xlu0 %630, %v45_v25  }
  0x3e   :  { %212 = vperm.xlu1 %622, %v767_v17  }
  0x40   :  { %97 = vperm.xlu0 %630, %v47_v26  }
  0x42   :  { %624 = vset.pattern.permute.xlu1 %v663_v2  ;;  %v476_v2 = vld [vmem:[%s1056_s3 + $0x48] sm:$0xff] }
  0x43   :  { %256 = vperm.xlu1 %624, %v24_v18  }
  0x44   :  { %107 = vperm.xlu0 %630, %v49_v27  }
  0x47   :  { %260 = vperm.xlu1 %624, %v25_v28  }
  0x48   :  { %117 = vperm.xlu0 %630, %v51_v29   ;;  %v479_v29 = vld [vmem:[%s1056_s3 + $0x60] sm:$0xff] }
  0x4b   :  { %268 = vperm.xlu1 %624, %v27_v20  }
  0x4c   :  { %127 = vperm.xlu0 %630, %v53_v30  }
  0x4f   :  { %276 = vperm.xlu1 %624, %v29_v21  }
  0x50   :  { %137 = vperm.xlu0 %630, %v703_v1  }
  0x53   :  { %284 = vperm.xlu1 %624, %v31_v31  }
  0x54   :  { %147 = vperm.xlu0 %630, %v25_v28  }
  0x57   :  { %292 = vperm.xlu1 %624, %v33_v32  }
  0x58   :  { %157 = vperm.xlu0 %630, %v27_v20  }
  0x5b   :  { %300 = vperm.xlu1 %624, %v35_v33  }
  0x5c   :  { %167 = vperm.xlu0 %630, %v29_v21  }
  0x5f   :  { %308 = vperm.xlu1 %624, %v828_v34  }
  0x60   :  { %177 = vperm.xlu0 %630, %v31_v31  }
  0x63   :  { %625 = vset.pattern.permute.xlu1 %v665_v19 }
  0x64   :  { %352 = vperm.xlu1 %625, %v703_v1   ;;  %187 = vperm.xlu0 %630, %v33_v32   ;;  %v217_v1 = vsub.s32 0, %v884_v60 }
  0x66   :  { %v904_v8 = vrot.slane %v22_v4, %v217_v1 }
  0x68   :  { %360 = vperm.xlu1 %625, %v25_v28   ;;  %197 = vperm.xlu0 %630, %v35_v33  }
  0x6c   :  { %364 = vperm.xlu1 %625, %v713_v5   ;;  %207 = vperm.xlu0 %630, %v828_v34  }
  0x70   :  { %627 = vset.pattern.permute.xlu1 %v664_v3  ;;  %490 = vperm.xlu0 %630, %v468_v35  }
  0x71   :  { %485 = vperm.xlu1 %627, %v467_v36  }
  0x74   :  { %505 = vperm.xlu0 %630, %v471_v37  }
  0x75   :  { %628 = vset.pattern.permute.xlu1 %v665_v19 }
  0x76   :  { %372 = vperm.xlu1 %628, %v722_v7  }
  0x78   :  { %520 = vperm.xlu0 %630, %v474_v38  }
  0x7a   :  { %629 = vset.pattern.permute.xlu1 %v664_v3 }
  0x7b   :  { %495 = vperm.xlu1 %629, %v469_v39  }
  0x7c   :  { %535 = vperm.xlu0 %630, %v477_v40  }
  0x7f   :  { %500 = vperm.xlu1 %629, %v470_v41  }
  0x80   :  { %636 = vset.pattern.permute.xlu0 %v665_v19 }
  0x81   :  { %v861_v42 = vpop.permute.xlu1 %67  ;;  %388 = vperm.xlu0 %636, %v740_v11   ;;  %v864_v43 = vpop.permute.xlu0 %252 }
  0x83   :  { %631 = vset.pattern.permute.xlu1 %v665_v19 }
  0x84   :  { %380 = vperm.xlu1 %631, %v731_v9  }
  0x85   :  { %v73_v44 = vpop.permute.xlu1 %72  ;;  %400 = vperm.xlu0 %636, %v35_v33   ;;  %v265_v45 = vpop.permute.xlu0 %264 }
  0x86   :  { %v322_v10 = vmul.f32 %v902_v6, %v265_v45 }
  0x88   :  { %384 = vperm.xlu1 %631, %v31_v31  }
  0x89   :  { %v83_v46 = vpop.permute.xlu1 %82  ;;  %412 = vperm.xlu0 %636, %v767_v17   ;;  %v273_v47 = vpop.permute.xlu0 %272 }
  0x8a   :  { %v324_v16 = vmul.f32 %v902_v6, %v273_v47 }
  0x8c   :  { %632 = vset.pattern.permute.xlu1 %v664_v3 }
  0x8d   :  { %v93_v50 = vpop.permute.xlu1 %92  ;;  %510 = vperm.xlu1 %632, %v472_v48   ;;  %v281_v51 = vpop.permute.xlu0 %280  ;;  %638 = vset.pattern.permute.xlu0 %v664_v3 }
  0x8e   :  { %555 = vperm.xlu0 %638, %v481_v49   ;;  %v326_v25 = vmul.f32 %v902_v6, %v281_v51 }
  0x91   :  { %v103_v53 = vpop.permute.xlu1 %102  ;;  %515 = vperm.xlu1 %632, %v473_v52   ;;  %v289_v54 = vpop.permute.xlu0 %288 }
  0x95   :  { %v113_v55 = vpop.permute.xlu1 %112  ;;  %633 = vset.pattern.permute.xlu1 %v665_v19  ;;  %v297_v56 = vpop.permute.xlu0 %296 }
  0x96   :  { %392 = vperm.xlu1 %633, %v33_v32   ;;  %v328_v32 = vmul.f32 %v902_v6, %v289_v54  ;;  %v330_v38 = vmul.f32 %v902_v6, %v297_v56 }
  0x99   :  { %v881_v58 = vpop.permute.xlu1 %122  ;;  %v305_v59 = vpop.permute.xlu0 %304 }
  0x9a   :  { %396 = vperm.xlu1 %633, %v749_v13   ;;  %v332_v48 = vmul.f32 %v902_v6, %v305_v59 }
  0x9d   :  { %v889_v62 = vpop.permute.xlu1 %132  ;;  %v891_v63 = vpop.permute.xlu0 %312 }
  0x9e   :  { %634 = vset.pattern.permute.xlu1 %v664_v3 }
  0x9f   :  { %525 = vperm.xlu1 %634, %v475_v61  }
  0xa1   :  { %v143_v5 = vpop.permute.xlu1 %142 }
  0xa2   :  { %v357_v7 = vpop.permute.xlu0 %356  ;;  %v220_v57 = vmul.f32 %v904_v8, %v143_v5 }
  0xa3   :  { %530 = vperm.xlu1 %634, %v476_v2  }
  0xa5   :  { %v153_v9 = vpop.permute.xlu1 %152 }
  0xa6   :  { %v222_v11 = vmul.f32 %v904_v8, %v153_v9  ;;  %v908_v12 = vpop.permute.xlu0 %368 }
  0xa7   :  { %635 = vset.pattern.permute.xlu1 %v665_v19  ;;  %v478_v19 = vld [vmem:[%s1056_s3 + $0x58] sm:$0xff] }
  0xa8   :  { %v238_v13 = vadd.f32 %v222_v11, %v73_v44  ;;  %404 = vperm.xlu1 %635, %v758_v15   ;;  %v482_v44 = vld [vmem:[%s1056_s3 + $0x78] sm:$0xff] }
  0xa9   :  { %v163_v14 = vpop.permute.xlu1 %162 }
  0xaa   :  { %v224_v17 = vmul.f32 %v904_v8, %v163_v14  ;;  %v914_v18 = vpop.permute.xlu0 %376  ;;  %v916_v20 = vadd.f32 %v322_v10, %v238_v13 }
  0xac   :  { %v240_v21 = vadd.f32 %v224_v17, %v83_v46  ;;  %408 = vperm.xlu1 %635, %v828_v34   ;;  %v417_v46 = vsub.s32 2, %v884_v60 }
  0xad   :  { %v173_v22 = vpop.permute.xlu1 %172 }
  0xae   :  { %v226_v23 = vmul.f32 %v904_v8, %v173_v22  ;;  %v923_v15 = vadd.f32 %v324_v16, %v240_v21 }
  0xaf   :  { %v925_v24 = vpop.permute.xlu0 %57 }
  0xb0   :  { %v242_v26 = vadd.f32 %v226_v23, %v93_v50  ;;  %637 = vset.pattern.permute.xlu1 %v664_v3  ;;  %v480_v3 = vld [vmem:[%s1056_s3 + $0x68] sm:$0xff] }
  0xb1   :  { %v183_v27 = vpop.permute.xlu1 %182  ;;  %540 = vperm.xlu1 %637, %v478_v19  }
  0xb2   :  { %v228_v28 = vmul.f32 %v904_v8, %v183_v27  ;;  %v933_v30 = vadd.f32 %v326_v25, %v242_v26 }
  0xb3   :  { %v63_v31 = vpop.permute.xlu0 %62 }
  0xb4   :  { %v244_v33 = vadd.f32 %v228_v28, %v103_v53  ;;  %v955_v53 = vrot.slane %v22_v4, %v417_v46  ;;  %v236_v61 = vadd.f32 %v220_v57, %v63_v31 }
  0xb5   :  { %v193_v34 = vpop.permute.xlu1 %192  ;;  %545 = vperm.xlu1 %637, %v479_v29  }
  0xb6   :  { %v230_v35 = vmul.f32 %v904_v8, %v193_v34  ;;  %v940_v36 = vadd.f32 %v328_v32, %v244_v33  ;;  %v423_v25 = vmul.f32 %v955_v53, %v908_v12  ;;  %v425_v34 = vmul.f32 %v955_v53, %v914_v18 }
  0xb7   :  { %v78_v37 = vpop.permute.xlu0 %77 }
  0xb8   :  { %v246_v39 = vadd.f32 %v230_v35, %v113_v55  ;;  %v334_v55 = vmul.f32 %v902_v6, %v891_v63 }
  0xb9   :  { %v203_v40 = vpop.permute.xlu1 %202  ;;  %550 = vperm.xlu1 %637, %v480_v3  }
  0xba   :  { %v232_v41 = vmul.f32 %v904_v8, %v203_v40  ;;  %v947_v45 = vadd.f32 %v330_v38, %v246_v39  ;;  %v319_v40 = vmul.f32 %v902_v6, %v864_v43 }
  0xbb   :  { %v88_v47 = vpop.permute.xlu0 %87 }
  0xbc   :  { %v248_v49 = vadd.f32 %v232_v41, %v881_v58  ;;  %v420_v58 = vmul.f32 %v955_v53, %v357_v7 }
  0xbd   :  { %v213_v50 = vpop.permute.xlu1 %212  ;;  %560 = vperm.xlu1 %637, %v482_v44  }
  0xbe   :  { %v234_v51 = vmul.f32 %v904_v8, %v213_v50  ;;  %v953_v52 = vadd.f32 %v332_v48, %v248_v49 }
  0xbf   :  { %v957_v54 = vpop.permute.xlu0 %97 }
  0xc0   :  { %v250_v56 = vadd.f32 %v234_v51, %v889_v62 }
  0xc2   :  { %v257_v59 = vpop.permute.xlu1 %256  ;;  %v963_v60 = vadd.f32 %v334_v55, %v250_v56 }
  0xc3   :  { %v320_v0 = vmul.f32 %v902_v6, %v257_v59  ;;  %v967_v1 = vpop.permute.xlu0 %107 }
  0xc5   :  { %v336_v2 = vadd.f32 %v320_v0, %v236_v61 }
  0xc6   :  { %v261_v4 = vpop.permute.xlu1 %260 }
  0xc7   :  { %v969_v9 = vpop.permute.xlu0 %117  ;;  %v436_v10 = vadd.f32 %v420_v58, %v336_v2  ;;  %v321_v43 = vmul.f32 %v902_v6, %v261_v4 }
  0xc9   :  { %v452_v51 = vmax.f32 %v436_v10, 0.0 }
  0xca   :  { %v269_v63 = vpop.permute.xlu1 %268 }
  0xcb   :  { %v971_v11 = vpop.permute.xlu0 %127  ;;  %v323_v21 = vmul.f32 %v902_v6, %v269_v63 }
  0xce   :  { %v277_v62 = vpop.permute.xlu1 %276 }
  0xcf   :  { %v138_v5 = vpop.permute.xlu0 %137  ;;  %v325_v28 = vmul.f32 %v902_v6, %v277_v62 }
  0xd0   :  { %v219_v3 = vmul.f32 %v904_v8, %v138_v5 }
  0xd2   :  { %v973_v13 = vpop.permute.xlu1 %284  ;;  %v235_v12 = vadd.f32 %v219_v3, %v925_v24 }
  0xd3   :  { %v148_v14 = vpop.permute.xlu0 %147 }
  0xd4   :  { %v221_v48 = vmul.f32 %v904_v8, %v148_v14 }
  0xd6   :  { %v975_v16 = vpop.permute.xlu1 %292  ;;  %v237_v55 = vadd.f32 %v221_v48, %v861_v42 }
  0xd7   :  { %v158_v7 = vpop.permute.xlu0 %157 }
  0xd8   :  { %v223_v17 = vmul.f32 %v904_v8, %v158_v7  ;;  %v337_v0 = vadd.f32 %v321_v43, %v237_v55 }
  0xda   :  { %v239_v22 = vadd.f32 %v223_v17, %v78_v37  ;;  %v979_v23 = vpop.permute.xlu1 %300 }
  0xdb   :  { %v168_v19 = vpop.permute.xlu0 %167 }
  0xdc   :  { %v339_v26 = vadd.f32 %v323_v21, %v239_v22  ;;  %v225_v27 = vmul.f32 %v904_v8, %v168_v19 }
  0xde   :  { %v241_v29 = vadd.f32 %v225_v27, %v88_v47  ;;  %v985_v31 = vpop.permute.xlu1 %308  ;;  %v439_v32 = vadd.f32 %v423_v25, %v339_v26  ;;  %v335_v47 = vadd.f32 %v319_v40, %v235_v12 }
  0xdf   :  { %v178_v33 = vpop.permute.xlu0 %177 }
  0xe0   :  { %v341_v35 = vadd.f32 %v325_v28, %v241_v29  ;;  %v455_v25 = vmax.f32 %v439_v32, 0.0  ;;  %v227_v32 = vmul.f32 %v904_v8, %v178_v33 }
  0xe2   :  { %v441_v37 = vadd.f32 %v425_v34, %v341_v35 }
  0xe3   :  { %v353_v38 = vpop.permute.xlu1 %352  ;;  %v188_v39 = vpop.permute.xlu0 %187 }
  0xe4   :  { %v419_v41 = vmul.f32 %v955_v53, %v353_v38 }
  0xe6   :  { %v435_v18 = vadd.f32 %v419_v41, %v335_v47 }
  0xe7   :  { %v361_v44 = vpop.permute.xlu1 %360  ;;  %v994_v46 = vpop.permute.xlu0 %197 }
  0xe8   :  { %v451_v24 = vmax.f32 %v435_v18, 0.0  ;;  %v421_v58 = vmul.f32 %v955_v53, %v361_v44  ;;  %v457_v18 = vmax.f32 %v441_v37, 0.0 }
  0xea   :  { %v437_v63 = vadd.f32 %v421_v58, %v337_v0  ;;  %v329_v0 = vmul.f32 %v902_v6, %v975_v16  ;;  %v231_v16 = vmul.f32 %v904_v8, %v994_v46 }
  0xeb   :  { %v365_v49 = vpop.permute.xlu1 %364  ;;  %v997_v50 = vpop.permute.xlu0 %207 }
  0xec   :  { %v422_v62 = vmul.f32 %v955_v53, %v365_v49  ;;  %v453_v10 = vmax.f32 %v437_v63, 0.0 }
  0xee   :  { %v438_v14 = vadd.f32 %v422_v62, %v916_v20 }
  0xef   :  { %v491_v56 = vpop.permute.xlu0 %490 }
  0xf0   :  { %v564_v57 = vmul.f32 %v491_v56, %v452_v51  ;;  %v486_v59 = vpop.permute.xlu1 %485  ;;  %v454_v21 = vmax.f32 %v438_v14, 0.0  ;;  %v243_v56 = vadd.f32 %v227_v32, %v957_v54 }
  0xf1   :  { %v563_v61 = vmul.f32 %v486_v59, %v451_v24 }
  0xf3   :  { %v579_v2 = vadd.f32 %v564_v57, %v563_v61  ;;  %v506_v22 = vpop.permute.xlu0 %505 }
  0xf4   :  { %v567_v26 = vmul.f32 %v506_v22, %v455_v25 }
  0xf5   :  { %v373_v5 = vpop.permute.xlu1 %372 }
  0xf6   :  { %v424_v28 = vmul.f32 %v955_v53, %v373_v5 }
  0xf7   :  { %v521_v38 = vpop.permute.xlu0 %520 }
  0xf8   :  { %v440_v35 = vadd.f32 %v424_v28, %v923_v15  ;;  %v229_v15 = vmul.f32 %v904_v8, %v188_v39 }
  0xfa   :  { %v496_v7 = vpop.permute.xlu1 %495  ;;  %v456_v40 = vmax.f32 %v440_v35, 0.0  ;;  %v245_v61 = vadd.f32 %v229_v15, %v967_v1 }
  0xfb   :  { %v565_v42 = vmul.f32 %v496_v7, %v453_v10  ;;  %v536_v49 = vpop.permute.xlu0 %535 }
  0xfc   :  { %v345_v62 = vadd.f32 %v329_v0, %v245_v61 }
  0xfd   :  { %v580_v17 = vadd.f32 %v579_v2, %v565_v42 }
  0xfe   :  { %v501_v19 = vpop.permute.xlu1 %500 }
  0xff   :  { %v566_v4 = vmul.f32 %v501_v19, %v454_v21 }
 0x100   :  { %v389_v33 = vpop.permute.xlu0 %388 }
 0x101   :  { %v581_v27 = vadd.f32 %v580_v17, %v566_v4  ;;  %v428_v54 = vmul.f32 %v955_v53, %v389_v33 }
 0x103   :  { %v381_v29 = vpop.permute.xlu1 %380  ;;  %v582_v34 = vadd.f32 %v581_v27, %v567_v26 }
 0x104   :  { %v426_v3 = vmul.f32 %v955_v53, %v381_v29  ;;  %v401_v28 = vpop.permute.xlu0 %400  ;;  %v233_v29 = vmul.f32 %v904_v8, %v997_v50 }
 0x105   :  { %v431_v35 = vmul.f32 %v955_v53, %v401_v28 }
 0x106   :  { %v442_v12 = vadd.f32 %v426_v3, %v933_v30  ;;  %v327_v30 = vmul.f32 %v902_v6, %v973_v13  ;;  %v444_v13 = vadd.f32 %v428_v54, %v940_v36  ;;  %v247_v36 = vadd.f32 %v231_v16, %v969_v9 }
 0x107   :  { %v385_v20 = vpop.permute.xlu1 %384 }
 0x108   :  { %v458_v47 = vmax.f32 %v442_v12, 0.0  ;;  %v427_v59 = vmul.f32 %v955_v53, %v385_v20  ;;  %v343_v37 = vadd.f32 %v327_v30, %v243_v56  ;;  %v460_v1 = vmax.f32 %v444_v13, 0.0 }
 0x109   :  { %v249_v20 = vadd.f32 %v233_v29, %v971_v11  ;;  %v333_v12 = vmul.f32 %v902_v6, %v985_v31 }
 0x10a   :  { %v570_v24 = vmul.f32 %v521_v38, %v458_v47  ;;  %v443_v2 = vadd.f32 %v427_v59, %v343_v37 }
 0x10c   :  { %v511_v41 = vpop.permute.xlu1 %510  ;;  %v459_v14 = vmax.f32 %v443_v2, 0.0 }
 0x10d   :  { %v568_v44 = vmul.f32 %v511_v41, %v456_v40  ;;  %v413_v41 = vpop.permute.xlu0 %412 }
 0x10e   :  { %v434_v47 = vmul.f32 %v955_v53, %v413_v41 }
 0x10f   :  { %v583_v48 = vadd.f32 %v582_v34, %v568_v44  ;;  %v331_v34 = vmul.f32 %v902_v6, %v979_v23  ;;  %v349_v23 = vadd.f32 %v333_v12, %v249_v20 }
 0x110   :  { %v516_v51 = vpop.permute.xlu1 %515  ;;  %v450_v6 = vadd.f32 %v434_v47, %v963_v60  ;;  %v601_v60 = vstv %s1057_s4 }
 0x111   :  { %v569_v55 = vmul.f32 %v516_v51, %v457_v18  ;;  %v347_v38 = vadd.f32 %v331_v34, %v247_v36  ;;  %v556_v15 = vpop.permute.xlu0 %555 }
 0x113   :  { %v584_v57 = vadd.f32 %v583_v48, %v569_v55  ;;  %v447_v40 = vadd.f32 %v431_v35, %v347_v38 }
 0x115   :  { %v393_v43 = vpop.permute.xlu1 %392  ;;  %v585_v58 = vadd.f32 %v584_v57, %v570_v24  ;;  %v463_v18 = vmax.f32 %v447_v40, 0.0 }
 0x116   :  { %v429_v39 = vmul.f32 %v955_v53, %v393_v43  ;;  %v466_v43 = vmax.f32 %v450_v6, 0.0 }
 0x118   :  { %v445_v5 = vadd.f32 %v429_v39, %v345_v62 }
 0x119   :  { %v397_v63 = vpop.permute.xlu1 %396 }
 0x11a   :  { %v461_v42 = vmax.f32 %v445_v5, 0.0  ;;  %v430_v4 = vmul.f32 %v955_v53, %v397_v63 }
 0x11c   :  { %v573_v19 = vmul.f32 %v536_v49, %v461_v42  ;;  %v446_v3 = vadd.f32 %v430_v4, %v947_v45 }
 0x11e   :  { %v526_v10 = vpop.permute.xlu1 %525  ;;  %v462_v50 = vmax.f32 %v446_v3, 0.0 }
 0x11f   :  { %v571_v7 = vmul.f32 %v526_v10, %v459_v14 }
 0x121   :  { %v586_v17 = vadd.f32 %v585_v58, %v571_v7 }
 0x122   :  { %v531_v21 = vpop.permute.xlu1 %530 }
 0x123   :  { %v572_v22 = vmul.f32 %v531_v21, %v460_v1 }
 0x125   :  { %v587_v25 = vadd.f32 %v586_v17, %v572_v22 }
 0x127   :  { %v405_v26 = vpop.permute.xlu1 %404  ;;  %v588_v27 = vadd.f32 %v587_v25, %v573_v19 }
 0x128   :  { %v432_v9 = vmul.f32 %v955_v53, %v405_v26 }
 0x12a   :  { %v448_v45 = vadd.f32 %v432_v9, %v953_v52 }
 0x12b   :  { %v409_v46 = vpop.permute.xlu1 %408 }
 0x12c   :  { %v433_v8 = vmul.f32 %v955_v53, %v409_v46  ;;  %v464_v56 = vmax.f32 %v448_v45, 0.0 }
 0x12e   :  { %v449_v48 = vadd.f32 %v433_v8, %v349_v23 }
 0x130   :  { %v541_v44 = vpop.permute.xlu1 %540  ;;  %v465_v31 = vmax.f32 %v449_v48, 0.0 }
 0x131   :  { %v574_v32 = vmul.f32 %v541_v44, %v462_v50 }
 0x132   :  { %v577_v30 = vmul.f32 %v556_v15, %v465_v31 }
 0x133   :  { %v589_v11 = vadd.f32 %v588_v27, %v574_v32 }
 0x134   :  { %v546_v49 = vpop.permute.xlu1 %545 }
 0x135   :  { %v575_v51 = vmul.f32 %v546_v49, %v463_v18 }
 0x137   :  { %v590_v55 = vadd.f32 %v589_v11, %v575_v51 }
 0x138   :  { %v551_v24 = vpop.permute.xlu1 %550 }
 0x139   :  { %v576_v57 = vmul.f32 %v551_v24, %v464_v56 }
 0x13b   :  { %v591_v59 = vadd.f32 %v590_v55, %v576_v57 }
 0x13c   :  { %v561_v58 = vpop.permute.xlu1 %560 }
 0x13d   :  { %v578_v53 = vmul.f32 %v561_v58, %v466_v43  ;;  %v592_v33 = vadd.f32 %v591_v59, %v577_v30 }
 0x13f   :  { %v593_v52 = vadd.f32 %v592_v33, %v578_v53 }
 0x141   :  { %v594_v61 = vrot.slane %v593_v52, 4 }
 0x143   :  { %v595_v37 = vadd.f32 %v594_v61, %v593_v52 }
 0x145   :  { %v596_v0 = vrot.slane %v595_v37, 2 }
 0x147   :  { %v597_v54 = vadd.f32 %v596_v0, %v595_v37 }
 0x149   :  { %v598_v2 = vrot.slane %v597_v54, 1 }
 0x14b   :  { %v599_v39 = vadd.f32 %v598_v2, %v597_v54 }
 0x14d   :  { %v602_v63 = vadd.f32 %v601_v60, %v599_v39 }
 0x14f   :  { %603 = vst [vmem:[#allocation3] sm:$0x1] %v602_v63 }
 0x150   :  { %650 = shalt.err (!%p647_p4)
}
 0x151   :  { %s651_s18 = scalar_lea.hbm %s1058_s5, 16 }
 0x152   :  { %p652_p5 = scmp.ne.s32.totalorder %s1058_s5, %s651_s18  ;;  %p655_p6 = scmp.lt.u32.totalorder %s651_s18, %s1058_s5 }
 0x154   :  { %p657_p7 = pnand %p655_p6, %p652_p5 }
 0x156   :  { %660 = shalt.err (!%p657_p7)
}
 0x157   :  { %613 = dma.vmem_to_hbm [thread:$0]  %s611_s13, 16, %s1058_s5, [#allocation4]  }
 0x158   :  { %661 = dma.done.wait [#allocation4], 16  }
 0x159   :  { %662 = vsyncadd [#allocation4], 4294967280 }
 0x15a   :  { %617 = vsyncpa [#allocation4], 1 }

</bundles_post_ra>
